<compile_context>
chip_gen: v5e
topology: v5e:2x2
jax: 0.10.0
libtpu: 0.0.40
codegen_flags: <defaults>
</compile_context>

<pallas_src>
import math
import functools

import jax
import jax.numpy as jnp
from jax import lax
from jax.experimental import pallas as pl
from jax.experimental.pallas import tpu as pltpu

_SQRT2_INV = 1.0 / math.sqrt(2.0)


# --------------------------- tile selection ----------------------------------

def _pick_tile(dim, target, unit):
    """Largest multiple of `unit` dividing `dim`, <= target; else the full dim
    (a full-extent block is always legal)."""
    if dim <= target:
        return dim
    best = None
    t = unit
    while t <= target:
        if dim % t == 0:
            best = t
        t += unit
    return best if best is not None else dim


# ------------------------------ kernel math -----------------------------------

def _gelu(y):
    # exact (erf-based) gelu, matching torch.nn.functional.gelu default
    return 0.5 * y * (1.0 + lax.erf(y * _SQRT2_INV))


def _layernorm(x, g, b, eps):
    xf = x.astype(jnp.float32)
    mean = jnp.mean(xf, axis=-1, keepdims=True)
    var = jnp.mean(jnp.square(xf - mean), axis=-1, keepdims=True)
    return (xf - mean) * lax.rsqrt(var + eps) * g + b


# ------------------------------- kernels --------------------------------------

def _matmul_bias_kernel(x_ref, w_ref, b_ref, o_ref, acc_ref, *, activation):
    """Tiled x @ w + b (optionally GELU).  Grid = (M, N, K); K is a reduction."""
    k = pl.program_id(2)

    @pl.when(k == 0)
    def _init():
        acc_ref[...] = jnp.zeros_like(acc_ref)

    acc_ref[...] += jnp.dot(x_ref[...].astype(jnp.bfloat16), w_ref[...],
                            preferred_element_type=jnp.float32)

    @pl.when(k == pl.num_programs(2) - 1)
    def _flush():
        y = acc_ref[...] + b_ref[...]
        if activation == "gelu":
            y = _gelu(y)
        o_ref[...] = y.astype(o_ref.dtype)


def _matmul_bias_residual_ln_kernel(x_ref, w_ref, b_ref, res_ref, g_ref, be_ref,
                                    o_ref, acc_ref, *, eps):
    """Tiled LayerNorm(x @ w + b + res).  Grid = (M, K); N kept whole so the
    LayerNorm sees full rows in the epilogue."""
    k = pl.program_id(1)

    @pl.when(k == 0)
    def _init():
        acc_ref[...] = jnp.zeros_like(acc_ref)

    acc_ref[...] += jnp.dot(x_ref[...].astype(jnp.bfloat16), w_ref[...],
                            preferred_element_type=jnp.float32)

    @pl.when(k == pl.num_programs(1) - 1)
    def _flush():
        y = acc_ref[...] + b_ref[...] + res_ref[...]
        o_ref[...] = _layernorm(y, g_ref[...], be_ref[...], eps).astype(o_ref.dtype)


def _layernorm_kernel(x_ref, g_ref, b_ref, o_ref, *, eps):
    o_ref[...] = _layernorm(x_ref[...], g_ref[...], b_ref[...], eps).astype(o_ref.dtype)


def _qkv_attention_kernel(h_ref, wqkv_ref, bqkv_ref, m_ref, o_ref, *,
                          num_heads, head_dim, scale):
    """Fused QKV projection + multi-head self-attention for one batch element.

    h_ref: (S, E) hidden, wqkv_ref: (E, 3E) bf16, bqkv_ref: (1, 3E) f32,
    m_ref: (1, S) additive mask (broadcast over queries).  Writes a single
    lane-dense (S, E) context block."""
    E = num_heads * head_dim
    h = h_ref[...].astype(jnp.bfloat16)                       # (S, E)
    qkv = jnp.dot(h, wqkv_ref[...],
                  preferred_element_type=jnp.float32)          # (S, 3E) f32
    qkv = (qkv + bqkv_ref[...]).astype(jnp.bfloat16)           # bf16 for the MXU
    mask = m_ref[...]                                          # (1, S) f32

    ctx = []
    for hh in range(num_heads):
        lo = hh * head_dim
        qh = qkv[:, lo:lo + head_dim]                          # (S, Dh)
        kh = qkv[:, E + lo:E + lo + head_dim]                  # (S, Dh)
        vh = qkv[:, 2 * E + lo:2 * E + lo + head_dim]          # (S, Dh)
        # contract head dims directly (no explicit K transpose)
        s = lax.dot_general(qh, kh, (((1,), (1,)), ((), ())),
                            preferred_element_type=jnp.float32)  # (S, S) f32
        s = s * scale + mask                       # broadcast mask over queries
        s = s - jnp.max(s, axis=-1, keepdims=True)
        p = jnp.exp(s)
        p = p * pl.reciprocal(jnp.sum(p, axis=-1, keepdims=True), approx=True)
        ctx.append(jnp.dot(p.astype(jnp.bfloat16), vh,
                           preferred_element_type=jnp.float32))  # (S, Dh)
    o_ref[...] = jnp.concatenate(ctx, axis=-1).astype(o_ref.dtype)


# ------------------------------- wrappers --------------------------------------

def linear_fused(x, w, b, activation=None, *, tm=256, tn=512, tk=512):
    """x:(M,K) f32, w:(K,N) bf16, b:(N,) f32 -> (M,N) f32 (optional GELU)."""
    M, K = x.shape
    _, N = w.shape
    TM = _pick_tile(M, tm, 8)
    TN = _pick_tile(N, tn, 128)
    TK = _pick_tile(K, tk, 128)
    grid = (M // TM, N // TN, K // TK)
    return pl.pallas_call(
        functools.partial(_matmul_bias_kernel, activation=activation),
        out_shape=jax.ShapeDtypeStruct((M, N), jnp.float32),
        grid=grid,
        in_specs=[
            pl.BlockSpec((TM, TK), lambda i, j, k: (i, k)),
            pl.BlockSpec((TK, TN), lambda i, j, k: (k, j)),
            pl.BlockSpec((1, TN), lambda i, j, k: (0, j)),
        ],
        out_specs=pl.BlockSpec((TM, TN), lambda i, j, k: (i, j)),
        scratch_shapes=[pltpu.VMEM((TM, TN), jnp.float32)],
        compiler_params=pltpu.CompilerParams(
            dimension_semantics=("parallel", "parallel", "arbitrary")),
    )(x, w, b.reshape(1, N))


def linear_residual_ln(x, w, b, res, g, be, eps, *, tm=256, tk=512):
    """LayerNorm(x @ w + b + res); output width kept whole for the LN rows."""
    M, K = x.shape
    _, N = w.shape
    TM = _pick_tile(M, tm, 8)
    TK = _pick_tile(K, tk, 128)
    grid = (M // TM, K // TK)
    return pl.pallas_call(
        functools.partial(_matmul_bias_residual_ln_kernel, eps=eps),
        out_shape=jax.ShapeDtypeStruct((M, N), jnp.float32),
        grid=grid,
        in_specs=[
            pl.BlockSpec((TM, TK), lambda i, k: (i, k)),
            pl.BlockSpec((TK, N), lambda i, k: (k, 0)),
            pl.BlockSpec((1, N), lambda i, k: (0, 0)),
            pl.BlockSpec((TM, N), lambda i, k: (i, 0)),
            pl.BlockSpec((1, N), lambda i, k: (0, 0)),
            pl.BlockSpec((1, N), lambda i, k: (0, 0)),
        ],
        out_specs=pl.BlockSpec((TM, N), lambda i, k: (i, 0)),
        scratch_shapes=[pltpu.VMEM((TM, N), jnp.float32)],
        compiler_params=pltpu.CompilerParams(
            dimension_semantics=("parallel", "arbitrary")),
    )(x, w, b.reshape(1, N), res, g.reshape(1, N), be.reshape(1, N))


def layernorm(x, g, b, eps, *, tm=256):
    M, E = x.shape
    TM = _pick_tile(M, tm, 8)
    return pl.pallas_call(
        functools.partial(_layernorm_kernel, eps=eps),
        out_shape=jax.ShapeDtypeStruct((M, E), jnp.float32),
        grid=(M // TM,),
        in_specs=[pl.BlockSpec((TM, E), lambda i: (i, 0)),
                  pl.BlockSpec((1, E), lambda i: (0, 0)),
                  pl.BlockSpec((1, E), lambda i: (0, 0))],
        out_specs=pl.BlockSpec((TM, E), lambda i: (i, 0)),
        compiler_params=pltpu.CompilerParams(dimension_semantics=("parallel",)),
    )(x, g.reshape(1, E), b.reshape(1, E))


def qkv_attention(h, wqkv, bqkv, add_mask, num_heads, head_dim, scale):
    """h:(B,S,E) f32, wqkv:(E,3E) bf16, bqkv:(3E,) f32, add_mask:(B,1,S) f32
    -> context (B,S,E) f32.  One batch element per grid step; the QKV weight
    block index is constant so the pipeline keeps it resident in VMEM."""
    B, S, E = h.shape
    threeE = 3 * E
    return pl.pallas_call(
        functools.partial(_qkv_attention_kernel, num_heads=num_heads,
                          head_dim=head_dim, scale=scale),
        out_shape=jax.ShapeDtypeStruct((B, S, E), jnp.float32),
        grid=(B,),
        in_specs=[pl.BlockSpec((None, S, E), lambda b: (b, 0, 0)),
                  pl.BlockSpec((E, threeE), lambda b: (0, 0)),
                  pl.BlockSpec((1, threeE), lambda b: (0, 0)),
                  pl.BlockSpec((None, 1, S), lambda b: (b, 0, 0))],
        out_specs=pl.BlockSpec((None, S, E), lambda b: (b, 0, 0)),
        compiler_params=pltpu.CompilerParams(dimension_semantics=("parallel",)),
    )(h, wqkv, bqkv.reshape(1, threeE), add_mask)


# ------------------------------ parameters -------------------------------------

def init_params(key, cfg):
    E = cfg["n_embd"]
    L = cfg["n_layer"]
    keys = jax.random.split(key, 4 + 12 * L)
    kit = iter(keys)

    def nrm(shape, dtype=jnp.float32):
        return (0.02 * jax.random.normal(next(kit), shape, jnp.float32)).astype(dtype)

    word_emb = nrm((cfg["vocab_size"], E)).at[0].set(0.0)   # padding_idx=0
    params = {
        "word_emb": word_emb,
        "pos_emb": nrm((cfg["max_positional_embeddings"], E)),
        "type_emb": nrm((cfg["type_vocab_size"], E)),
        "emb_ln_g": jnp.ones((E,), jnp.float32),
        "emb_ln_b": jnp.zeros((E,), jnp.float32),
        "layers": [],
    }
    for _ in range(L):
        wq, wk, wv = nrm((E, E)), nrm((E, E)), nrm((E, E))
        bq, bk, bv = nrm((E,)), nrm((E,)), nrm((E,))
        params["layers"].append({
            # fused Q/K/V projection, weights stored bf16 for the MXU
            "wqkv": jnp.concatenate([wq, wk, wv], axis=1).astype(jnp.bfloat16),
            "bqkv": jnp.concatenate([bq, bk, bv], axis=0),
            "wo": nrm((E, E), jnp.bfloat16), "bo": nrm((E,)),
            "ln1_g": jnp.ones((E,), jnp.float32), "ln1_b": jnp.zeros((E,), jnp.float32),
            "wi": nrm((E, 4 * E), jnp.bfloat16), "bi": nrm((4 * E,)),
            "wo2": nrm((4 * E, E), jnp.bfloat16), "bo2": nrm((E,)),
            "ln2_g": jnp.ones((E,), jnp.float32), "ln2_b": jnp.zeros((E,), jnp.float32),
        })
    return params


# ----------------------------- model forward ------------------------------------

def syntax_bert_forward(params, cfg, input_ids, token_type_ids=None,
                        attention_mask=None, output_all_encoded_layers=True):
    B, S = input_ids.shape
    E = cfg["n_embd"]
    H = cfg["n_layer"]            # quirk: num_attn_heads = config.n_layer
    Dh = E // H
    eps = cfg["layer_norm_eps"]

    if attention_mask is None:
        attention_mask = jnp.ones_like(input_ids)
    if token_type_ids is None:
        token_type_ids = jnp.zeros_like(input_ids)

    # additive mask kept at (B,1,S); broadcast over queries inside the kernel
    add_mask = ((1.0 - attention_mask.astype(jnp.float32)) * -10000.0)[:, None, :]

    # TODO(synk): embedding table gathers stay in plain JAX (no clean Pallas
    # gather here); everything downstream runs in Pallas kernels.
    pos_ids = jnp.arange(S, dtype=jnp.int32)
    emb = (jnp.take(params["word_emb"], input_ids, axis=0)
           + jnp.take(params["pos_emb"], pos_ids, axis=0)[None, :, :]
           + jnp.take(params["type_emb"], token_type_ids, axis=0))
    h = layernorm(emb.reshape(B * S, E), params["emb_ln_g"], params["emb_ln_b"], eps)

    scale = 1.0 / math.sqrt(H)    # quirk: PyTorch divides by sqrt(num_heads)

    all_layers = []
    for p in params["layers"]:
        ctx = qkv_attention(h.reshape(B, S, E), p["wqkv"], p["bqkv"],
                            add_mask, H, Dh, scale)                 # (B, S, E)
        attn_out = linear_residual_ln(ctx.reshape(B * S, E), p["wo"], p["bo"], h,
                                      p["ln1_g"], p["ln1_b"], eps)
        inter = linear_fused(attn_out, p["wi"], p["bi"], activation="gelu")
        # SyntaxBertOutput hardcodes eps=1e-12 regardless of config
        h = linear_residual_ln(inter, p["wo2"], p["bo2"], attn_out,
                               p["ln2_g"], p["ln2_b"], 1e-12)
        all_layers.append(h.reshape(B, S, E))

    if not output_all_encoded_layers:
        return all_layers[-1]
    return all_layers


# ---------------------------------- main -----------------------------------------

if __name__ == "__main__":
    cfg = dict(vocab_size=100, max_positional_embeddings=64, layer_norm_eps=1e-12,
               type_vocab_size=2, n_embd=32, n_layer=2, dropout=0.1, bias=True)

    key = jax.random.PRNGKey(0)
    pkey, ikey, tkey = jax.random.split(key, 3)
    params = init_params(pkey, cfg)

    B, S = 2, 8
    input_ids = jax.random.randint(ikey, (B, S), 1, cfg["vocab_size"], dtype=jnp.int32)
    token_type_ids = jax.random.randint(tkey, (B, S), 0, cfg["type_vocab_size"],
                                        dtype=jnp.int32)
    attention_mask = jnp.ones((B, S), dtype=jnp.int32)

    outs = syntax_bert_forward(params, cfg, input_ids, token_type_ids, attention_mask,
                               output_all_encoded_layers=True)
    for o in outs:
        jax.block_until_ready(o)
    print("KERNEL_OK")
</pallas_src>

<mosaic_0001>
module attributes {stable_mosaic.version = 11 : i64} {
  func.func @_layernorm_kernel(%arg0: i32, %arg1: memref<16x32xf32, #tpu.memory_space<vmem>>, %arg2: memref<1x32xf32, #tpu.memory_space<vmem>>, %arg3: memref<1x32xf32, #tpu.memory_space<vmem>>, %arg4: memref<16x32xf32, #tpu.memory_space<vmem>>) attributes {dimension_semantics = [#tpu.dimension_semantics<parallel>], iteration_bounds = array<i64: 1>, scalar_prefetch = 0 : i64, scratch_operands = 0 : i64, tpu.core_type = #tpu.core_type<tc>, window_params = [{transform_indices = @transform_0, window_bounds = array<i64: 16, 32>}, {pipeline_mode = #tpu.pipeline_mode<synchronous>, transform_indices = @transform_1, window_bounds = array<i64: 1, 32>}, {pipeline_mode = #tpu.pipeline_mode<synchronous>, transform_indices = @transform_2, window_bounds = array<i64: 1, 32>}, {transform_indices = @transform_3, window_bounds = array<i64: 16, 32>}]} {
    %c0 = arith.constant 0 : index
    %c0_0 = arith.constant 0 : index
    %0 = vector.load %arg1[%c0, %c0_0] : memref<16x32xf32, #tpu.memory_space<vmem>>, vector<16x32xf32>
    %c0_1 = arith.constant 0 : index
    %c0_2 = arith.constant 0 : index
    %1 = vector.load %arg2[%c0_1, %c0_2] : memref<1x32xf32, #tpu.memory_space<vmem>>, vector<1x32xf32>
    %c0_3 = arith.constant 0 : index
    %c0_4 = arith.constant 0 : index
    %2 = vector.load %arg3[%c0_3, %c0_4] : memref<1x32xf32, #tpu.memory_space<vmem>>, vector<1x32xf32>
    %cst = arith.constant dense<0.000000e+00> : vector<16xf32>
    %3 = vector.multi_reduction <add>, %0, %cst [1] : vector<16x32xf32> to vector<16xf32>
    %4 = vector.shape_cast %3 : vector<16xf32> to vector<16x1xf32>
    %cst_5 = arith.constant 3.200000e+01 : f32
    %5 = vector.broadcast %cst_5 : f32 to vector<16x1xf32>
    %6 = arith.divf %4, %5 : vector<16x1xf32>
    %7 = vector.broadcast %6 : vector<16x1xf32> to vector<16x32xf32>
    %8 = arith.subf %0, %7 : vector<16x32xf32>
    %9 = arith.mulf %8, %8 : vector<16x32xf32>
    %cst_6 = arith.constant dense<0.000000e+00> : vector<16xf32>
    %10 = vector.multi_reduction <add>, %9, %cst_6 [1] : vector<16x32xf32> to vector<16xf32>
    %11 = vector.shape_cast %10 : vector<16xf32> to vector<16x1xf32>
    %cst_7 = arith.constant 3.200000e+01 : f32
    %12 = vector.broadcast %cst_7 : f32 to vector<16x1xf32>
    %13 = arith.divf %11, %12 : vector<16x1xf32>
    %14 = vector.broadcast %6 : vector<16x1xf32> to vector<16x32xf32>
    %15 = arith.subf %0, %14 : vector<16x32xf32>
    %cst_8 = arith.constant 9.99999996E-13 : f32
    %16 = vector.broadcast %cst_8 : f32 to vector<16x1xf32>
    %17 = arith.addf %13, %16 : vector<16x1xf32>
    %18 = math.rsqrt %17 : vector<16x1xf32>
    %19 = vector.broadcast %18 : vector<16x1xf32> to vector<16x32xf32>
    %20 = arith.mulf %15, %19 : vector<16x32xf32>
    %21 = vector.broadcast %1 : vector<1x32xf32> to vector<16x32xf32>
    %22 = arith.mulf %20, %21 : vector<16x32xf32>
    %23 = vector.broadcast %2 : vector<1x32xf32> to vector<16x32xf32>
    %24 = arith.addf %22, %23 : vector<16x32xf32>
    %c0_9 = arith.constant 0 : index
    %c0_10 = arith.constant 0 : index
    %25 = vector.load %arg4[%c0_9, %c0_10] : memref<16x32xf32, #tpu.memory_space<vmem>>, vector<16x32xf32>
    tpu.vector_store %arg4[%c0_9, %c0_10], %24 {strides = array<i32>} : memref<16x32xf32, #tpu.memory_space<vmem>>, vector<16x32xf32>,
    return
  }
  func.func @transform_0(%arg0: i32) -> (i32, i32) {
    %c0_i32 = arith.constant 0 : i32
    %c0_i32_0 = arith.constant 0 : i32
    return %arg0, %c0_i32 : i32, i32
  }
  func.func @transform_1(%arg0: i32) -> (i32, i32) {
    %c0_i32 = arith.constant 0 : i32
    %c0_i32_0 = arith.constant 0 : i32
    %c0_i32_1 = arith.constant 0 : i32
    return %c0_i32, %c0_i32_0 : i32, i32
  }
  func.func @transform_2(%arg0: i32) -> (i32, i32) {
    %c0_i32 = arith.constant 0 : i32
    %c0_i32_0 = arith.constant 0 : i32
    %c0_i32_1 = arith.constant 0 : i32
    return %c0_i32, %c0_i32_0 : i32, i32
  }
  func.func @transform_3(%arg0: i32) -> (i32, i32) {
    %c0_i32 = arith.constant 0 : i32
    %c0_i32_0 = arith.constant 0 : i32
    return %arg0, %c0_i32 : i32, i32
  }
}

</mosaic_0001>

<bundles_post_ra>
// kernel: tpu_custom_call.1
= control target key start
LH: loop header
LB: loop body
LE: loop exit
PB: predicated region body
PF: predicated region fallthrough
CT: control target
= control target key end

     0   :  { %8 = vsyncpa [#allocation3], 0  ;;  %s275_s0 = inlined_call_operand.hbm [shape: f32[16,32], index: 0, kind: input, shape index: {}]   ;;  %s276_s1 = inlined_call_operand.hbm [shape: f32[1,32], index: 1, kind: input, shape index: {}]   ;;  %s277_s2 = inlined_call_operand.vmem [shape: f32[1,32], index: 2, kind: input, shape index: {}]   ;;  %s278_s3 = inlined_call_operand.hbm [shape: f32[16,32], index: 3, kind: output, shape index: {}]  }
   0x1   :  { %9 = vsyncpa [#allocation6], 0 }
   0x2   :  { %10 = vsyncpa [#allocation4], 0  ;;  %s15_s14 = sshll.u32 %s275_s0, 4  ;;  %s225_s15 = smov [#allocation2]   ;;  %s16_s14 = int_to_ptr.hbm [resolvable:$true] %s15_s14 }
   0x3   :  { %s17_s16 = sshll.u32 %s225_s15, 4  ;;  %s29_s19 = sshll.u32 %s276_s1, 4  ;;  %s18_s16 = int_to_ptr.vmem [resolvable:$true] %s17_s16  ;;  %s30_s19 = int_to_ptr.hbm [resolvable:$true] %s29_s19 }
   0x4   :  { %s226_s20 = smov 128   ;;  %s227_s21 = smov 8  }
   0x5   :  { %23 = dma.hbm_to_vmem [thread:$0]  %s16_s14, 256, %s18_s16, [#allocation3], %s226_s20, %s226_s20, %s227_s21  }
   0x6   :  { %s228_s22 = smov [#allocation5]  }
   0x7   :  { %s31_s23 = sshll.u32 %s228_s22, 4  ;;  %s32_s23 = int_to_ptr.vmem [resolvable:$true] %s31_s23 }
   0x8   :  { %34 = dma.hbm_to_vmem [thread:$0]  %s30_s19, 16, %s32_s23, [#allocation6]  }
   0x9   :  { %219 = dma.done.wait [#allocation3], 256  }
   0xa   :  { %220 = vsyncadd [#allocation3], 4294967040 }
   0xb   :  { %221 = dma.done.wait [#allocation6], 16  }
   0xc   :  { %222 = vsyncadd [#allocation6], 4294967280  ;;  %vm49_vm0 = vcmask 261120   ;;  %v45_v0 = vld [vmem:[#allocation2] sm:$0xff]  ;;  %v46_v2 = vld [vmem:[#allocation2 + $0x8] sm:$0xff]  ;;  %v229_v4 = vmov 32.0  }
   0xd   :  { %v50_v1 = vsel %vm49_vm0, %v45_v0, 0.0  ;;  %v53_v3 = vsel %vm49_vm0, %v46_v2, 0.0  ;;  %141 = vrcp.f32 %v229_v4  ;;  %v139_v35 = vld [vmem:[#allocation5] ss:$0 sm:$0xff]  ;;  %v140_v39 = vld [vmem:[%s277_s2] ss:$0 sm:$0xff] }
   0xe   :  { %51 = vadd.xlane.f32.xlu0 %v50_v1  ;;  %s230_s24 = smov [#allocation7]   ;;  %s119_s28 = sshll.u32 %s278_s3, 4  ;;  %s120_s28 = int_to_ptr.hbm [resolvable:$true] %s119_s28 }
   0xf   :  { %s117_s25 = sshll.u32 %s230_s24, 4  ;;  %s118_s25 = int_to_ptr.vmem [resolvable:$true] %s117_s25 }
  0x13   :  { %v142_v5 = vpop.eup %141 }
  0x14   :  { %v57_v6 = vmul.f32 32.0, %v142_v5  ;;  %vm61_vm1 = vweird.f32 %v142_v5 }
  0x16   :  { %54 = vadd.xlane.f32.xlu0 %v53_v3  ;;  %v58_v7 = vsub.f32 1.0, %v57_v6 }
  0x18   :  { %v59_v8 = vmul.f32 %v142_v5, %v58_v7 }
  0x1a   :  { %v60_v9 = vadd.f32 %v142_v5, %v59_v8 }
  0x1c   :  { %v62_v10 = vsel %vm61_vm1, %v142_v5, %v60_v9 }
  0x81   :  { %v52_v11 = vpop.xlane.xlu0 %51 }
  0x82   :  { %v63_v12 = vmul.f32 %v62_v10, %v52_v11 }
  0x84   :  { %v65_v13 = vsub.f32 %v45_v0, %v63_v12 }
  0x86   :  { %v67_v14 = vmul.f32 %v65_v13, %v65_v13 }
  0x88   :  { %v69_v15 = vsel %vm49_vm0, %v67_v14, 0.0 }
  0x89   :  { %70 = vadd.xlane.f32.xlu1 %v69_v15  ;;  %v55_v16 = vpop.xlane.xlu0 %54 }
  0x8a   :  { %v64_v17 = vmul.f32 %v62_v10, %v55_v16 }
  0x8c   :  { %v66_v18 = vsub.f32 %v46_v2, %v64_v17 }
  0x8e   :  { %v68_v19 = vmul.f32 %v66_v18, %v66_v18 }
  0x90   :  { %v72_v20 = vsel %vm49_vm0, %v68_v19, 0.0 }
  0x91   :  { %73 = vadd.xlane.f32.xlu1 %v72_v20 }
  0xfc   :  { %v71_v21 = vpop.xlane.xlu1 %70 }
  0xfd   :  { %v75_v22 = vmul.f32 %v71_v21, %v62_v10 }
  0xff   :  { %v77_v23 = vadd.f32 1e-12, %v75_v22 }
 0x101   :  { %143 = vrsqrt.f32 %v77_v23  ;;  %vm85_vm3 = vweird.f32 %v77_v23 }
 0x104   :  { %v74_v24 = vpop.xlane.xlu1 %73 }
 0x105   :  { %v76_v25 = vmul.f32 %v74_v24, %v62_v10 }
 0x107   :  { %v144_v26 = vpop.eup %143  ;;  %v78_v27 = vadd.f32 1e-12, %v76_v25 }
 0x108   :  { %v80_v28 = vmul.f32 %v144_v26, %v77_v23  ;;  %vm86_vm2 = vweird.f32 %v144_v26 }
 0x109   :  { %145 = vrsqrt.f32 %v78_v27  ;;  %vm87_vm4 = vmor %vm85_vm3, %vm86_vm2  ;;  %vm95_vm6 = vweird.f32 %v78_v27 }
 0x10a   :  { %v81_v29 = vmul.f32 %v144_v26, %v80_v28 }
 0x10c   :  { %v82_v30 = vmul.f32 0.5, %v81_v29 }
 0x10e   :  { %v83_v31 = vsub.f32 1.5, %v82_v30 }
 0x10f   :  { %v146_v32 = vpop.eup %145 }
 0x110   :  { %v84_v33 = vmul.f32 %v144_v26, %v83_v31  ;;  %v90_v34 = vmul.f32 %v146_v32, %v78_v27  ;;  %vm96_vm5 = vweird.f32 %v146_v32 }
 0x111   :  { %vm97_vm7 = vmor %vm95_vm6, %vm96_vm5 }
 0x112   :  { %v88_v36 = vsel %vm87_vm4, %v144_v26, %v84_v33  ;;  %v91_v37 = vmul.f32 %v146_v32, %v90_v34 }
 0x113   :  { %v99_v38 = vmul.f32 %v88_v36, %v65_v13 }
 0x114   :  { %v92_v40 = vmul.f32 0.5, %v91_v37 }
 0x115   :  { %v104_v41 = vmul.f32 %v139_v35, %v99_v38 }
 0x116   :  { %v93_v42 = vsub.f32 1.5, %v92_v40 }
 0x117   :  { %v109_v43 = vadd.f32 %v140_v39, %v104_v41 }
 0x118   :  { %v94_v44 = vmul.f32 %v146_v32, %v93_v42 }
 0x119   :  { %111 = vst.msk [vmem:[#allocation7] sm:$0xff] %vm49_vm0, %v109_v43 }
 0x11a   :  { %v98_v45 = vsel %vm97_vm7, %v146_v32, %v94_v44 }
 0x11b   :  { %v100_v46 = vmul.f32 %v98_v45, %v66_v18 }
 0x11d   :  { %v105_v47 = vmul.f32 %v139_v35, %v100_v46 }
 0x11f   :  { %v110_v48 = vadd.f32 %v140_v39, %v105_v47 }
 0x121   :  { %112 = vst.msk [vmem:[#allocation7 + $0x8] sm:$0xff] %vm49_vm0, %v110_v48 }
 0x122   :  { %125 = dma.vmem_to_hbm [thread:$0]  %s118_s25, 256, %s120_s28, [#allocation4], %s226_s20, %s226_s20, %s227_s21  }
 0x123   :  { %223 = dma.done.wait [#allocation4], 256  }
 0x124   :  { %224 = vsyncadd [#allocation4], 4294967040 }
 0x125   :  { %130 = vsyncpa [#allocation3], 1 }
 0x126   :  { %131 = vsyncpa [#allocation6], 1 }
 0x127   :  { %132 = vsyncpa [#allocation4], 1 }

</bundles_post_ra>
